<compile_context>
chip_gen: v6e
topology: v6e:2x2x1
jax: 0.10.0
libtpu: 0.0.40
codegen_flags: <defaults>
</compile_context>

<pallas_src>
import functools

import jax
import jax.numpy as jnp
from jax import lax
from jax.experimental import pallas as pl
from jax.experimental.pallas import tpu as pltpu


def _round_up(a, m):
    return ((a + m - 1) // m) * m


def cnn_lstm_kernel(x_ref, convw_ref, convb_ref, wih_ref, whh_ref, b_ref,
                    fcw_ref, fcb_ref, out_ref, *, hidden_dim, seq_len,
                    kernel_size):
    H = hidden_dim
    L = seq_len - kernel_size + 1                      # valid-conv output length

    x = x_ref[...]                                     # (bb, F) bf16
    bb = x.shape[0]

    # ---- Conv1d ('valid') + ReLU: time-invariant -> single MXU matmul -------
    # convw_ref = sum_j conv_w[:, :, j] transposed to (F, H), bf16.
    x_conv = jnp.maximum(
        jnp.dot(x, convw_ref[...], preferred_element_type=jnp.float32)
        + convb_ref[...],
        0.0)                                           # (bb, H) f32
    xc_bf = x_conv.astype(jnp.bfloat16)

    # ---- Hoisted, fused input-gate contribution (loop-invariant) ------------
    # wih_ref is (H, 4H) with gate order i|f|g|o along lanes; b = b_ih + b_hh.
    gx = (jnp.dot(xc_bf, wih_ref[...], preferred_element_type=jnp.float32)
          + b_ref[...])                                # (bb, 4H) f32, lane-dense

    whh = whh_ref[...]                                 # (H, 4H) bf16, resident

    # ---- LSTM recurrence: one lane-dense matmul on the critical path --------
    def step(_, carry):
        h, c = carry                                   # (bb, H) f32 each
        z = gx + jnp.dot(h.astype(jnp.bfloat16), whh,
                         preferred_element_type=jnp.float32)   # (bb, 4H) f32
        a = jax.nn.sigmoid(z)                          # full 128-lane EUP pass
        t = jnp.tanh(z)
        i_g = a[:, 0 * H:1 * H]                        # static lane slices (XLU)
        f_g = a[:, 1 * H:2 * H]
        g_g = t[:, 2 * H:3 * H]
        o_g = a[:, 3 * H:4 * H]
        c_new = f_g * c + i_g * g_g
        h_new = o_g * jnp.tanh(c_new)
        return h_new, c_new

    h0 = jnp.zeros((bb, H), jnp.float32)
    c0 = jnp.zeros((bb, H), jnp.float32)
    h, _ = lax.fori_loop(0, L, step, (h0, c0), unroll=True)

    # Dropout is identity at inference (eval mode).
    # ---- Final Linear on last step (output[:, -1, :] == h), lane-padded -----
    out_ref[...] = (jnp.dot(h.astype(jnp.bfloat16), fcw_ref[...],
                            preferred_element_type=jnp.float32)
                    + fcb_ref[...]).astype(out_ref.dtype)


def cnn_lstm_forward(x, params, *, hidden_dim, kernel_size, seq_len=8,
                     block_b=64):
    B, F_in = x.shape
    H, K, T = hidden_dim, kernel_size, seq_len
    O = params["fc_w"].shape[0]
    O_pad = max(128, _round_up(O, 128))                # lane-dense output

    # Batch tile: multiple of 16 sublanes (bf16 tiles), aim for >= 2 grid steps
    # on larger batches so both v7x TensorCores get work.
    bb_target = _round_up(max(16, -(-B // 2)), 16)
    bb = min(_round_up(block_b, 16), bb_target)
    B_pad = _round_up(B, bb)
    x_pad = jnp.pad(x, ((0, B_pad - B), (0, 0))).astype(jnp.bfloat16)

    # ---- Parameter re-layout (glue): torch layouts -> matmul-friendly -------
    convw_sum = params["conv_w"].sum(axis=2).T.astype(jnp.bfloat16)   # (F, H)
    convb = params["conv_b"].reshape(1, H).astype(jnp.float32)
    # PyTorch gate order i|f|g|o kept along the lane axis.
    wih = params["w_ih"].T.astype(jnp.bfloat16)                       # (H, 4H)
    whh = params["w_hh"].T.astype(jnp.bfloat16)                       # (H, 4H)
    b = (params["b_ih"] + params["b_hh"]).reshape(1, 4 * H).astype(jnp.float32)
    fcw = jnp.pad(params["fc_w"].T, ((0, 0), (0, O_pad - O))).astype(jnp.bfloat16)
    fcb = jnp.pad(params["fc_b"], (0, O_pad - O)).reshape(1, O_pad).astype(jnp.float32)

    kern = functools.partial(cnn_lstm_kernel, hidden_dim=H, seq_len=T,
                             kernel_size=K)
    const = lambda ndim: (lambda i: (0,) * ndim)       # weights stay resident

    out_pad = pl.pallas_call(
        kern,
        out_shape=jax.ShapeDtypeStruct((B_pad, O_pad), jnp.bfloat16),
        grid=(B_pad // bb,),
        in_specs=[
            pl.BlockSpec((bb, F_in), lambda i: (i, 0)),    # x tile per grid step
            pl.BlockSpec((F_in, H), const(2)),             # conv weight (summed)
            pl.BlockSpec((1, H), const(2)),                # conv bias
            pl.BlockSpec((H, 4 * H), const(2)),            # W_ih fused (i|f|g|o)
            pl.BlockSpec((H, 4 * H), const(2)),            # W_hh fused (i|f|g|o)
            pl.BlockSpec((1, 4 * H), const(2)),            # b_ih + b_hh fused
            pl.BlockSpec((H, O_pad), const(2)),            # fc weight (lane-padded)
            pl.BlockSpec((1, O_pad), const(2)),            # fc bias
        ],
        out_specs=pl.BlockSpec((bb, O_pad), lambda i: (i, 0)),
        compiler_params=pltpu.CompilerParams(
            dimension_semantics=("parallel",)),
    )(x_pad, convw_sum, convb, wih, whh, b, fcw, fcb)

    return out_pad[:B, :O].astype(jnp.float32)


def reference_forward(x, params, *, hidden_dim, kernel_size):
    """Pure-JAX f32 reference mirroring the PyTorch forward (eval mode)."""
    B, F_in = x.shape
    T, H, K = 8, hidden_dim, kernel_size
    emb = jnp.broadcast_to(x[:, None, :], (B, T, F_in))          # (B, 8, F)
    L = T - K + 1
    conv_w, conv_b = params["conv_w"], params["conv_b"]          # (H,F,K),(H,)
    conved = []
    for t in range(L):
        acc = conv_b[None, :]
        for j in range(K):
            acc = acc + emb[:, t + j, :] @ conv_w[:, :, j].T
        conved.append(jnp.maximum(acc, 0.0))
    h = jnp.zeros((B, H), jnp.float32)
    c = jnp.zeros((B, H), jnp.float32)
    for t in range(L):
        g = (conved[t] @ params["w_ih"].T + params["b_ih"][None, :]
             + h @ params["w_hh"].T + params["b_hh"][None, :])
        i_g = jax.nn.sigmoid(g[:, 0 * H:1 * H])
        f_g = jax.nn.sigmoid(g[:, 1 * H:2 * H])
        g_g = jnp.tanh(g[:, 2 * H:3 * H])
        o_g = jax.nn.sigmoid(g[:, 3 * H:4 * H])
        c = f_g * c + i_g * g_g
        h = o_g * jnp.tanh(c)
    return h @ params["fc_w"].T + params["fc_b"][None, :]


def init_params(key, input_size, hidden_dim, output_dim, kernel_size):
    ks = jax.random.split(key, 8)
    u = lambda k, shape, s=0.1: jax.random.uniform(
        k, shape, jnp.float32, minval=-s, maxval=s)
    return {
        "conv_w": u(ks[0], (hidden_dim, input_size, kernel_size)),
        "conv_b": u(ks[1], (hidden_dim,)),
        "w_ih":   u(ks[2], (4 * hidden_dim, hidden_dim)),
        "w_hh":   u(ks[3], (4 * hidden_dim, hidden_dim)),
        "b_ih":   u(ks[4], (4 * hidden_dim,)),
        "b_hh":   u(ks[5], (4 * hidden_dim,)),
        "fc_w":   u(ks[6], (output_dim, hidden_dim)),
        "fc_b":   u(ks[7], (output_dim,)),
    }


if __name__ == "__main__":
    B, INPUT_SIZE, HIDDEN, OUT_DIM, KSIZE = 2, 16, 32, 5, 3
    # dropout rate is irrelevant at inference (identity).

    key = jax.random.PRNGKey(0)
    k_x, k_p = jax.random.split(key)
    x = jax.random.normal(k_x, (B, INPUT_SIZE), jnp.float32)
    params = init_params(k_p, INPUT_SIZE, HIDDEN, OUT_DIM, KSIZE)

    out = cnn_lstm_forward(x, params, hidden_dim=HIDDEN, kernel_size=KSIZE)
    out = jax.block_until_ready(out)

    ref = reference_forward(x, params, hidden_dim=HIDDEN, kernel_size=KSIZE)
    assert out.shape == (B, OUT_DIM)
    # bf16 MXU operands / bf16 h re-quantization over L steps / bf16 output
    # store (f32 accumulation throughout) -> loosened tolerance vs f32 ref.
    assert jnp.allclose(out, ref, rtol=5e-2, atol=2e-2), (out, ref)

    print("KERNEL_OK")
</pallas_src>

<mosaic_0001>
module attributes {stable_mosaic.version = 11 : i64} {
  func.func @cnn_lstm_kernel(%arg0: i32, %arg1: memref<16x16xbf16, #tpu.memory_space<vmem>>, %arg2: memref<16x32xbf16, #tpu.memory_space<vmem>>, %arg3: memref<1x32xf32, #tpu.memory_space<vmem>>, %arg4: memref<32x128xbf16, #tpu.memory_space<vmem>>, %arg5: memref<32x128xbf16, #tpu.memory_space<vmem>>, %arg6: memref<1x128xf32, #tpu.memory_space<vmem>>, %arg7: memref<32x128xbf16, #tpu.memory_space<vmem>>, %arg8: memref<1x128xf32, #tpu.memory_space<vmem>>, %arg9: memref<16x128xbf16, #tpu.memory_space<vmem>>) attributes {dimension_semantics = [#tpu.dimension_semantics<parallel>], iteration_bounds = array<i64: 1>, scalar_prefetch = 0 : i64, scratch_operands = 0 : i64, tpu.core_type = #tpu.core_type<tc>, window_params = [{transform_indices = @transform_0, window_bounds = array<i64: 16, 16>}, {pipeline_mode = #tpu.pipeline_mode<synchronous>, transform_indices = @transform_1, window_bounds = array<i64: 16, 32>}, {pipeline_mode = #tpu.pipeline_mode<synchronous>, transform_indices = @transform_2, window_bounds = array<i64: 1, 32>}, {pipeline_mode = #tpu.pipeline_mode<synchronous>, transform_indices = @transform_3, window_bounds = array<i64: 32, 128>}, {pipeline_mode = #tpu.pipeline_mode<synchronous>, transform_indices = @transform_4, window_bounds = array<i64: 32, 128>}, {pipeline_mode = #tpu.pipeline_mode<synchronous>, transform_indices = @transform_5, window_bounds = array<i64: 1, 128>}, {pipeline_mode = #tpu.pipeline_mode<synchronous>, transform_indices = @transform_6, window_bounds = array<i64: 32, 128>}, {pipeline_mode = #tpu.pipeline_mode<synchronous>, transform_indices = @transform_7, window_bounds = array<i64: 1, 128>}, {transform_indices = @transform_8, window_bounds = array<i64: 16, 128>}]} {
    %c0 = arith.constant 0 : index
    %c0_0 = arith.constant 0 : index
    %0 = vector.load %arg1[%c0, %c0_0] : memref<16x16xbf16, #tpu.memory_space<vmem>>, vector<16x16xbf16>
    %c0_1 = arith.constant 0 : index
    %c0_2 = arith.constant 0 : index
    %1 = vector.load %arg2[%c0_1, %c0_2] : memref<16x32xbf16, #tpu.memory_space<vmem>>, vector<16x32xbf16>
    %cst = arith.constant dense<0.000000e+00> : vector<16x32xf32>
    %2 = tpu.matmul %0, %1, %cst {dimension_numbers = #tpu.dot_dimension_numbers<[1], [0], [0], [1], [0, 0, 1, 1], [], []>} : vector<16x16xbf16>, vector<16x32xbf16>, vector<16x32xf32> -> vector<16x32xf32>
    %c0_3 = arith.constant 0 : index
    %c0_4 = arith.constant 0 : index
    %3 = vector.load %arg3[%c0_3, %c0_4] : memref<1x32xf32, #tpu.memory_space<vmem>>, vector<1x32xf32>
    %4 = vector.broadcast %3 : vector<1x32xf32> to vector<16x32xf32>
    %5 = arith.addf %2, %4 : vector<16x32xf32>
    %cst_5 = arith.constant 0.000000e+00 : f32
    %6 = vector.broadcast %cst_5 : f32 to vector<16x32xf32>
    %7 = arith.maximumf %5, %6 : vector<16x32xf32>
    %8 = arith.truncf %7 : vector<16x32xf32> to vector<16x32xbf16>
    %c0_6 = arith.constant 0 : index
    %c0_7 = arith.constant 0 : index
    %9 = vector.load %arg4[%c0_6, %c0_7] : memref<32x128xbf16, #tpu.memory_space<vmem>>, vector<32x128xbf16>
    %cst_8 = arith.constant dense<0.000000e+00> : vector<16x128xf32>
    %10 = tpu.matmul %8, %9, %cst_8 {dimension_numbers = #tpu.dot_dimension_numbers<[1], [0], [0], [1], [0, 0, 1, 1], [], []>} : vector<16x32xbf16>, vector<32x128xbf16>, vector<16x128xf32> -> vector<16x128xf32>
    %c0_9 = arith.constant 0 : index
    %c0_10 = arith.constant 0 : index
    %11 = vector.load %arg6[%c0_9, %c0_10] : memref<1x128xf32, #tpu.memory_space<vmem>>, vector<1x128xf32>
    %12 = vector.broadcast %11 : vector<1x128xf32> to vector<16x128xf32>
    %13 = arith.addf %10, %12 : vector<16x128xf32>
    %c0_11 = arith.constant 0 : index
    %c0_12 = arith.constant 0 : index
    %14 = vector.load %arg5[%c0_11, %c0_12] : memref<32x128xbf16, #tpu.memory_space<vmem>>, vector<32x128xbf16>
    %cst_13 = arith.constant 0.000000e+00 : f32
    %15 = vector.broadcast %cst_13 : f32 to vector<16x32xf32>
    %cst_14 = arith.constant 0.000000e+00 : f32
    %16 = vector.broadcast %cst_14 : f32 to vector<16x32xf32>
    %c0_i32 = arith.constant 0 : i32
    %17 = arith.truncf %15 : vector<16x32xf32> to vector<16x32xbf16>
    %cst_15 = arith.constant dense<0.000000e+00> : vector<16x128xf32>
    %18 = tpu.matmul %17, %14, %cst_15 {dimension_numbers = #tpu.dot_dimension_numbers<[1], [0], [0], [1], [0, 0, 1, 1], [], []>} : vector<16x32xbf16>, vector<32x128xbf16>, vector<16x128xf32> -> vector<16x128xf32>
    %19 = arith.addf %13, %18 : vector<16x128xf32>
    %20 = arith.negf %19 : vector<16x128xf32>
    %21 = math.exp %20 : vector<16x128xf32>
    %cst_16 = arith.constant 1.000000e+00 : f32
    %22 = vector.broadcast %cst_16 : f32 to vector<16x128xf32>
    %23 = arith.addf %22, %21 : vector<16x128xf32>
    %24 = arith.divf %22, %23 : vector<16x128xf32>
    %25 = math.tanh %19 : vector<16x128xf32>
    %26 = vector.extract_strided_slice %24 {offsets = [0, 0], sizes = [16, 32], strides = [1, 1]} : vector<16x128xf32> to vector<16x32xf32>
    %27 = vector.extract_strided_slice %24 {offsets = [0, 32], sizes = [16, 32], strides = [1, 1]} : vector<16x128xf32> to vector<16x32xf32>
    %28 = vector.extract_strided_slice %25 {offsets = [0, 64], sizes = [16, 32], strides = [1, 1]} : vector<16x128xf32> to vector<16x32xf32>
    %29 = vector.extract_strided_slice %24 {offsets = [0, 96], sizes = [16, 32], strides = [1, 1]} : vector<16x128xf32> to vector<16x32xf32>
    %30 = arith.mulf %27, %16 : vector<16x32xf32>
    %31 = arith.mulf %26, %28 : vector<16x32xf32>
    %32 = arith.addf %30, %31 : vector<16x32xf32>
    %33 = math.tanh %32 : vector<16x32xf32>
    %34 = arith.mulf %29, %33 : vector<16x32xf32>
    %c1_i32 = arith.constant 1 : i32
    %35 = arith.truncf %34 : vector<16x32xf32> to vector<16x32xbf16>
    %cst_17 = arith.constant dense<0.000000e+00> : vector<16x128xf32>
    %36 = tpu.matmul %35, %14, %cst_17 {dimension_numbers = #tpu.dot_dimension_numbers<[1], [0], [0], [1], [0, 0, 1, 1], [], []>} : vector<16x32xbf16>, vector<32x128xbf16>, vector<16x128xf32> -> vector<16x128xf32>
    %37 = arith.addf %13, %36 : vector<16x128xf32>
    %38 = arith.negf %37 : vector<16x128xf32>
    %39 = math.exp %38 : vector<16x128xf32>
    %cst_18 = arith.constant 1.000000e+00 : f32
    %40 = vector.broadcast %cst_18 : f32 to vector<16x128xf32>
    %41 = arith.addf %40, %39 : vector<16x128xf32>
    %42 = arith.divf %40, %41 : vector<16x128xf32>
    %43 = math.tanh %37 : vector<16x128xf32>
    %44 = vector.extract_strided_slice %42 {offsets = [0, 0], sizes = [16, 32], strides = [1, 1]} : vector<16x128xf32> to vector<16x32xf32>
    %45 = vector.extract_strided_slice %42 {offsets = [0, 32], sizes = [16, 32], strides = [1, 1]} : vector<16x128xf32> to vector<16x32xf32>
    %46 = vector.extract_strided_slice %43 {offsets = [0, 64], sizes = [16, 32], strides = [1, 1]} : vector<16x128xf32> to vector<16x32xf32>
    %47 = vector.extract_strided_slice %42 {offsets = [0, 96], sizes = [16, 32], strides = [1, 1]} : vector<16x128xf32> to vector<16x32xf32>
    %48 = arith.mulf %45, %32 : vector<16x32xf32>
    %49 = arith.mulf %44, %46 : vector<16x32xf32>
    %50 = arith.addf %48, %49 : vector<16x32xf32>
    %51 = math.tanh %50 : vector<16x32xf32>
    %52 = arith.mulf %47, %51 : vector<16x32xf32>
    %c2_i32 = arith.constant 2 : i32
    %53 = arith.truncf %52 : vector<16x32xf32> to vector<16x32xbf16>
    %cst_19 = arith.constant dense<0.000000e+00> : vector<16x128xf32>
    %54 = tpu.matmul %53, %14, %cst_19 {dimension_numbers = #tpu.dot_dimension_numbers<[1], [0], [0], [1], [0, 0, 1, 1], [], []>} : vector<16x32xbf16>, vector<32x128xbf16>, vector<16x128xf32> -> vector<16x128xf32>
    %55 = arith.addf %13, %54 : vector<16x128xf32>
    %56 = arith.negf %55 : vector<16x128xf32>
    %57 = math.exp %56 : vector<16x128xf32>
    %cst_20 = arith.constant 1.000000e+00 : f32
    %58 = vector.broadcast %cst_20 : f32 to vector<16x128xf32>
    %59 = arith.addf %58, %57 : vector<16x128xf32>
    %60 = arith.divf %58, %59 : vector<16x128xf32>
    %61 = math.tanh %55 : vector<16x128xf32>
    %62 = vector.extract_strided_slice %60 {offsets = [0, 0], sizes = [16, 32], strides = [1, 1]} : vector<16x128xf32> to vector<16x32xf32>
    %63 = vector.extract_strided_slice %60 {offsets = [0, 32], sizes = [16, 32], strides = [1, 1]} : vector<16x128xf32> to vector<16x32xf32>
    %64 = vector.extract_strided_slice %61 {offsets = [0, 64], sizes = [16, 32], strides = [1, 1]} : vector<16x128xf32> to vector<16x32xf32>
    %65 = vector.extract_strided_slice %60 {offsets = [0, 96], sizes = [16, 32], strides = [1, 1]} : vector<16x128xf32> to vector<16x32xf32>
    %66 = arith.mulf %63, %50 : vector<16x32xf32>
    %67 = arith.mulf %62, %64 : vector<16x32xf32>
    %68 = arith.addf %66, %67 : vector<16x32xf32>
    %69 = math.tanh %68 : vector<16x32xf32>
    %70 = arith.mulf %65, %69 : vector<16x32xf32>
    %c3_i32 = arith.constant 3 : i32
    %71 = arith.truncf %70 : vector<16x32xf32> to vector<16x32xbf16>
    %cst_21 = arith.constant dense<0.000000e+00> : vector<16x128xf32>
    %72 = tpu.matmul %71, %14, %cst_21 {dimension_numbers = #tpu.dot_dimension_numbers<[1], [0], [0], [1], [0, 0, 1, 1], [], []>} : vector<16x32xbf16>, vector<32x128xbf16>, vector<16x128xf32> -> vector<16x128xf32>
    %73 = arith.addf %13, %72 : vector<16x128xf32>
    %74 = arith.negf %73 : vector<16x128xf32>
    %75 = math.exp %74 : vector<16x128xf32>
    %cst_22 = arith.constant 1.000000e+00 : f32
    %76 = vector.broadcast %cst_22 : f32 to vector<16x128xf32>
    %77 = arith.addf %76, %75 : vector<16x128xf32>
    %78 = arith.divf %76, %77 : vector<16x128xf32>
    %79 = math.tanh %73 : vector<16x128xf32>
    %80 = vector.extract_strided_slice %78 {offsets = [0, 0], sizes = [16, 32], strides = [1, 1]} : vector<16x128xf32> to vector<16x32xf32>
    %81 = vector.extract_strided_slice %78 {offsets = [0, 32], sizes = [16, 32], strides = [1, 1]} : vector<16x128xf32> to vector<16x32xf32>
    %82 = vector.extract_strided_slice %79 {offsets = [0, 64], sizes = [16, 32], strides = [1, 1]} : vector<16x128xf32> to vector<16x32xf32>
    %83 = vector.extract_strided_slice %78 {offsets = [0, 96], sizes = [16, 32], strides = [1, 1]} : vector<16x128xf32> to vector<16x32xf32>
    %84 = arith.mulf %81, %68 : vector<16x32xf32>
    %85 = arith.mulf %80, %82 : vector<16x32xf32>
    %86 = arith.addf %84, %85 : vector<16x32xf32>
    %87 = math.tanh %86 : vector<16x32xf32>
    %88 = arith.mulf %83, %87 : vector<16x32xf32>
    %c4_i32 = arith.constant 4 : i32
    %89 = arith.truncf %88 : vector<16x32xf32> to vector<16x32xbf16>
    %cst_23 = arith.constant dense<0.000000e+00> : vector<16x128xf32>
    %90 = tpu.matmul %89, %14, %cst_23 {dimension_numbers = #tpu.dot_dimension_numbers<[1], [0], [0], [1], [0, 0, 1, 1], [], []>} : vector<16x32xbf16>, vector<32x128xbf16>, vector<16x128xf32> -> vector<16x128xf32>
    %91 = arith.addf %13, %90 : vector<16x128xf32>
    %92 = arith.negf %91 : vector<16x128xf32>
    %93 = math.exp %92 : vector<16x128xf32>
    %cst_24 = arith.constant 1.000000e+00 : f32
    %94 = vector.broadcast %cst_24 : f32 to vector<16x128xf32>
    %95 = arith.addf %94, %93 : vector<16x128xf32>
    %96 = arith.divf %94, %95 : vector<16x128xf32>
    %97 = math.tanh %91 : vector<16x128xf32>
    %98 = vector.extract_strided_slice %96 {offsets = [0, 0], sizes = [16, 32], strides = [1, 1]} : vector<16x128xf32> to vector<16x32xf32>
    %99 = vector.extract_strided_slice %96 {offsets = [0, 32], sizes = [16, 32], strides = [1, 1]} : vector<16x128xf32> to vector<16x32xf32>
    %100 = vector.extract_strided_slice %97 {offsets = [0, 64], sizes = [16, 32], strides = [1, 1]} : vector<16x128xf32> to vector<16x32xf32>
    %101 = vector.extract_strided_slice %96 {offsets = [0, 96], sizes = [16, 32], strides = [1, 1]} : vector<16x128xf32> to vector<16x32xf32>
    %102 = arith.mulf %99, %86 : vector<16x32xf32>
    %103 = arith.mulf %98, %100 : vector<16x32xf32>
    %104 = arith.addf %102, %103 : vector<16x32xf32>
    %105 = math.tanh %104 : vector<16x32xf32>
    %106 = arith.mulf %101, %105 : vector<16x32xf32>
    %c5_i32 = arith.constant 5 : i32
    %107 = arith.truncf %106 : vector<16x32xf32> to vector<16x32xbf16>
    %cst_25 = arith.constant dense<0.000000e+00> : vector<16x128xf32>
    %108 = tpu.matmul %107, %14, %cst_25 {dimension_numbers = #tpu.dot_dimension_numbers<[1], [0], [0], [1], [0, 0, 1, 1], [], []>} : vector<16x32xbf16>, vector<32x128xbf16>, vector<16x128xf32> -> vector<16x128xf32>
    %109 = arith.addf %13, %108 : vector<16x128xf32>
    %110 = arith.negf %109 : vector<16x128xf32>
    %111 = math.exp %110 : vector<16x128xf32>
    %cst_26 = arith.constant 1.000000e+00 : f32
    %112 = vector.broadcast %cst_26 : f32 to vector<16x128xf32>
    %113 = arith.addf %112, %111 : vector<16x128xf32>
    %114 = arith.divf %112, %113 : vector<16x128xf32>
    %115 = math.tanh %109 : vector<16x128xf32>
    %116 = vector.extract_strided_slice %114 {offsets = [0, 0], sizes = [16, 32], strides = [1, 1]} : vector<16x128xf32> to vector<16x32xf32>
    %117 = vector.extract_strided_slice %114 {offsets = [0, 32], sizes = [16, 32], strides = [1, 1]} : vector<16x128xf32> to vector<16x32xf32>
    %118 = vector.extract_strided_slice %115 {offsets = [0, 64], sizes = [16, 32], strides = [1, 1]} : vector<16x128xf32> to vector<16x32xf32>
    %119 = vector.extract_strided_slice %114 {offsets = [0, 96], sizes = [16, 32], strides = [1, 1]} : vector<16x128xf32> to vector<16x32xf32>
    %120 = arith.mulf %117, %104 : vector<16x32xf32>
    %121 = arith.mulf %116, %118 : vector<16x32xf32>
    %122 = arith.addf %120, %121 : vector<16x32xf32>
    %123 = math.tanh %122 : vector<16x32xf32>
    %124 = arith.mulf %119, %123 : vector<16x32xf32>
    %125 = arith.truncf %124 : vector<16x32xf32> to vector<16x32xbf16>
    %c0_27 = arith.constant 0 : index
    %c0_28 = arith.constant 0 : index
    %126 = vector.load %arg7[%c0_27, %c0_28] : memref<32x128xbf16, #tpu.memory_space<vmem>>, vector<32x128xbf16>
    %cst_29 = arith.constant dense<0.000000e+00> : vector<16x128xf32>
    %127 = tpu.matmul %125, %126, %cst_29 {dimension_numbers = #tpu.dot_dimension_numbers<[1], [0], [0], [1], [0, 0, 1, 1], [], []>} : vector<16x32xbf16>, vector<32x128xbf16>, vector<16x128xf32> -> vector<16x128xf32>
    %c0_30 = arith.constant 0 : index
    %c0_31 = arith.constant 0 : index
    %128 = vector.load %arg8[%c0_30, %c0_31] : memref<1x128xf32, #tpu.memory_space<vmem>>, vector<1x128xf32>
    %129 = vector.broadcast %128 : vector<1x128xf32> to vector<16x128xf32>
    %130 = arith.addf %127, %129 : vector<16x128xf32>
    %131 = arith.truncf %130 : vector<16x128xf32> to vector<16x128xbf16>
    %c0_32 = arith.constant 0 : index
    %c0_33 = arith.constant 0 : index
    %132 = vector.load %arg9[%c0_32, %c0_33] : memref<16x128xbf16, #tpu.memory_space<vmem>>, vector<16x128xbf16>
    tpu.vector_store %arg9[%c0_32, %c0_33], %131 {strides = array<i32>} : memref<16x128xbf16, #tpu.memory_space<vmem>>, vector<16x128xbf16>,
    return
  }
  func.func @transform_0(%arg0: i32) -> (i32, i32) {
    %c0_i32 = arith.constant 0 : i32
    %c0_i32_0 = arith.constant 0 : i32
    return %arg0, %c0_i32 : i32, i32
  }
  func.func @transform_1(%arg0: i32) -> (i32, i32) {
    %c0_i32 = arith.constant 0 : i32
    %c0_i32_0 = arith.constant 0 : i32
    %c0_i32_1 = arith.constant 0 : i32
    return %c0_i32, %c0_i32_0 : i32, i32
  }
  func.func @transform_2(%arg0: i32) -> (i32, i32) {
    %c0_i32 = arith.constant 0 : i32
    %c0_i32_0 = arith.constant 0 : i32
    %c0_i32_1 = arith.constant 0 : i32
    return %c0_i32, %c0_i32_0 : i32, i32
  }
  func.func @transform_3(%arg0: i32) -> (i32, i32) {
    %c0_i32 = arith.constant 0 : i32
    %c0_i32_0 = arith.constant 0 : i32
    %c0_i32_1 = arith.constant 0 : i32
    return %c0_i32, %c0_i32_0 : i32, i32
  }
  func.func @transform_4(%arg0: i32) -> (i32, i32) {
    %c0_i32 = arith.constant 0 : i32
    %c0_i32_0 = arith.constant 0 : i32
    %c0_i32_1 = arith.constant 0 : i32
    return %c0_i32, %c0_i32_0 : i32, i32
  }
  func.func @transform_5(%arg0: i32) -> (i32, i32) {
    %c0_i32 = arith.constant 0 : i32
    %c0_i32_0 = arith.constant 0 : i32
    %c0_i32_1 = arith.constant 0 : i32
    return %c0_i32, %c0_i32_0 : i32, i32
  }
  func.func @transform_6(%arg0: i32) -> (i32, i32) {
    %c0_i32 = arith.constant 0 : i32
    %c0_i32_0 = arith.constant 0 : i32
    %c0_i32_1 = arith.constant 0 : i32
    return %c0_i32, %c0_i32_0 : i32, i32
  }
  func.func @transform_7(%arg0: i32) -> (i32, i32) {
    %c0_i32 = arith.constant 0 : i32
    %c0_i32_0 = arith.constant 0 : i32
    %c0_i32_1 = arith.constant 0 : i32
    return %c0_i32, %c0_i32_0 : i32, i32
  }
  func.func @transform_8(%arg0: i32) -> (i32, i32) {
    %c0_i32 = arith.constant 0 : i32
    %c0_i32_0 = arith.constant 0 : i32
    return %arg0, %c0_i32 : i32, i32
  }
}

</mosaic_0001>

<bundles_post_ra>
// kernel: tpu_custom_call.1
= control target key start
LH: loop header
LB: loop body
LE: loop exit
PB: predicated region body
PF: predicated region fallthrough
CT: control target
= control target key end

     0   :  { %13 = vsyncpa [#allocation3], 0  ;;  %s1535_s0 = inlined_call_operand.hbm [shape: bf16[16,16], index: 0, kind: input, shape index: {}]   ;;  %s1536_s1 = inlined_call_operand.hbm [shape: bf16[16,32], index: 1, kind: input, shape index: {}]   ;;  %s1537_s2 = inlined_call_operand.vmem [shape: f32[1,32], index: 2, kind: input, shape index: {}]   ;;  %s1538_s3 = inlined_call_operand.hbm [shape: bf16[32,128], index: 3, kind: input, shape index: {}]   ;;  %s1539_s4 = inlined_call_operand.hbm [shape: bf16[32,128], index: 4, kind: input, shape index: {}]   ;;  %s1540_s5 = inlined_call_operand.vmem [shape: f32[1,128], index: 5, kind: input, shape index: {}]   ;;  %s1541_s6 = inlined_call_operand.hbm [shape: bf16[32,128], index: 6, kind: input, shape index: {}]   ;;  %s1542_s7 = inlined_call_operand.vmem [shape: f32[1,128], index: 7, kind: input, shape index: {}]   ;;  %s1543_s8 = inlined_call_operand.hbm [shape: bf16[16,128], index: 8, kind: output, shape index: {}]  }
   0x1   :  { %14 = vsyncpa [#allocation6], 0 }
   0x2   :  { %15 = vsyncpa [#allocation9], 0 }
   0x3   :  { %16 = vsyncpa [#allocation4], 0  ;;  %s1317_s27 = smov [#allocation5]   ;;  %s1318_s29 = smov [#allocation8]  }
   0x4   :  { %s34_s28 = sshll.u32 %s1317_s27, 4  ;;  %s60_s30 = sshll.u32 %s1318_s29, 4  ;;  %s35_s28 = int_to_ptr.vmem [resolvable:$true] %s34_s28  ;;  %s61_s30 = int_to_ptr.vmem [resolvable:$true] %s60_s30 }
   0x5   :  { %s1197_s9 = scalar_lea.vmem %s35_s28, 128  ;;  %p1202_p1 = scmp.lt.s32.totalorder %s35_s28, %s35_s28 }
   0x6   :  { %p1198_p0 = scmp.ne.s32.totalorder %s35_s28, %s1197_s9  ;;  %p1203_p2 = scmp.lt.s32.totalorder %s1197_s9, %s1197_s9 }
   0x8   :  { %p1204_p3 = por %p1203_p2, %p1202_p1 }
   0xa   :  { %p1205_p4 = pnand %p1204_p3, %p1198_p0 }
   0xc   :  { %1208 = shalt.err (!%p1205_p4)
}
   0xd   :  { %s1319_s10 = smov 64   ;;  %s1320_s11 = smov 4  }
   0xe   :  { %40 = dma.hbm_to_vmem [thread:$0]  %s1536_s1, 128, %s35_s28, [#allocation6], %s1319_s10, %s1319_s10, %s1320_s11  }
   0xf   :  { %s1217_s14 = scalar_lea.vmem %s61_s30, 256  ;;  %p1222_p6 = scmp.lt.s32.totalorder %s61_s30, %s61_s30 }
  0x10   :  { %p1218_p5 = scmp.ne.s32.totalorder %s61_s30, %s1217_s14  ;;  %p1223_p7 = scmp.lt.s32.totalorder %s1217_s14, %s1217_s14 }
  0x12   :  { %p1224_p8 = por %p1223_p7, %p1222_p6 }
  0x14   :  { %p1225_p9 = pnand %p1224_p8, %p1218_p5 }
  0x16   :  { %1228 = shalt.err (!%p1225_p9)
}
  0x17   :  { %66 = dma.hbm_to_vmem [thread:$0]  %s1539_s4, 256, %s61_s30, [#allocation9], %s1319_s10, %s1319_s10, %s1320_s11  }
  0x18   :  { %s1321_s17 = smov [#allocation2]   ;;  %s1322_s19 = smov [#allocation7]  }
  0x19   :  { %s22_s18 = sshll.u32 %s1321_s17, 4  ;;  %s48_s20 = sshll.u32 %s1322_s19, 4  ;;  %s23_s18 = int_to_ptr.vmem [resolvable:$true] %s22_s18  ;;  %s49_s20 = int_to_ptr.vmem [resolvable:$true] %s48_s20 }
  0x1a   :  { %s1237_s1 = scalar_lea.vmem %s23_s18, 128  ;;  %p1242_p11 = scmp.lt.s32.totalorder %s23_s18, %s23_s18 }
  0x1b   :  { %p1238_p10 = scmp.ne.s32.totalorder %s23_s18, %s1237_s1  ;;  %p1243_p12 = scmp.lt.s32.totalorder %s1237_s1, %s1237_s1 }
  0x1d   :  { %p1244_p13 = por %p1243_p12, %p1242_p11 }
  0x1f   :  { %p1245_p0 = pnand %p1244_p13, %p1238_p10 }
  0x21   :  { %1248 = shalt.err (!%p1245_p0)
}
  0x22   :  { %28 = dma.hbm_to_vmem [thread:$0]  %s1535_s0, 128, %s23_s18, [#allocation3], %s1319_s10, %s1319_s10, %s1320_s11  }
  0x23   :  { %s1257_s4 = scalar_lea.vmem %s49_s20, 256  ;;  %p1262_p2 = scmp.lt.s32.totalorder %s49_s20, %s49_s20 }
  0x24   :  { %p1258_p1 = scmp.ne.s32.totalorder %s49_s20, %s1257_s4  ;;  %p1263_p3 = scmp.lt.s32.totalorder %s1257_s4, %s1257_s4 }
  0x26   :  { %p1264_p4 = por %p1263_p3, %p1262_p2 }
  0x28   :  { %p1265_p5 = pnand %p1264_p4, %p1258_p1 }
  0x2a   :  { %1268 = shalt.err (!%p1265_p5)
}
  0x2b   :  { %54 = dma.hbm_to_vmem [thread:$0]  %s1538_s3, 256, %s49_s20, [#allocation6], %s1319_s10, %s1319_s10, %s1320_s11  }
  0x2c   :  { %s1323_s25 = smov [#allocation10]  }
  0x2d   :  { %s74_s26 = sshll.u32 %s1323_s25, 4  ;;  %s75_s26 = int_to_ptr.vmem [resolvable:$true] %s74_s26 }
  0x2e   :  { %s1277_s27 = scalar_lea.vmem %s75_s26, 256  ;;  %p1282_p7 = scmp.lt.s32.totalorder %s75_s26, %s75_s26 }
  0x2f   :  { %p1278_p6 = scmp.ne.s32.totalorder %s75_s26, %s1277_s27  ;;  %p1283_p8 = scmp.lt.s32.totalorder %s1277_s27, %s1277_s27 }
  0x31   :  { %p1284_p9 = por %p1283_p8, %p1282_p7 }
  0x33   :  { %p1285_p10 = pnand %p1284_p9, %p1278_p6 }
  0x35   :  { %1288 = shalt.err (!%p1285_p10)
}
  0x36   :  { %80 = dma.hbm_to_vmem [thread:$0]  %s1541_s6, 256, %s75_s26, [#allocation9], %s1319_s10, %s1319_s10, %s1320_s11  }
  0x37   :  { %1309 = dma.done.wait [#allocation3], 128  }
  0x38   :  { %1310 = vsyncadd [#allocation3], 4294967168 }
  0x39   :  { %1311 = dma.done.wait [#allocation6], 384  }
  0x3a   :  { %1312 = vsyncadd [#allocation6], 4294966912 }
  0x3b   :  { %1313 = dma.done.wait [#allocation9], 512  }
  0x3c   :  { %1314 = vsyncadd [#allocation9], 4294966784  ;;  %v1324_v0 = vmov 0.0   ;;  %vm1325_vm0 = vmmov 0   ;;  %v1085_v1 = vld [vmem:[#allocation5] sm:$0xff]   ;;  %v1086_v2 = vld [vmem:[#allocation2] sm:$0xff]  }
  0x3d   :  { %1003 = vmatprep.subr.bf16.mxu0 %v1324_v0  ;;  %1005 = vmatprep.mubr.msk.bf16.mxu0 %vm1325_vm0, %v1324_v0  ;;  %vm121_vm1 = vcmask 130048   ;;  %v1413_v3 = vld [vmem:[#allocation8 + $0x8] sm:$0xff]   ;;  %v1088_v4 = vld [vmem:[#allocation7 + $0x8] sm:$0xff]   ;;  %v1417_v5 = vld [vmem:[#allocation8] sm:$0xff]   ;;  %v1326_v7 = vmov 0   ;;  %vm192_vm2 = vcmask 261120  }
  0x3e   :  { %1009 = vmatprep.subr.bf16.mxu1 %v1324_v0  ;;  %1013 = vmatprep.mubr.msk.bf16.mxu1 %vm1325_vm0, %v1324_v0  ;;  %v1090_v6 = vld [vmem:[#allocation7] sm:$0xff]   ;;  %v937_v8 = vld [vmem:[%s1537_s2] ss:$0 sm:$0xff]  ;;  %s1328_s12 = smov [#allocation11]  }
  0x3f   :  { %1004 = vmatpush3.bf16.msra.mxu0 %v1085_v1  ;;  %1010 = vmatpush3.bf16.msra.mxu1 %v1088_v4  ;;  %v941_v22 = vld [vmem:[%s1540_s5] ss:$0 sm:$0xff]  ;;  %s1327_s5 = smov 32   ;;  %s923_s13 = sshll.u32 %s1328_s12, 4  ;;  %s924_s13 = int_to_ptr.vmem [resolvable:$true] %s923_s13 }
  0x40   :  { %1017 = vmatprep.subr.bf16.mxu0 %v1324_v0  ;;  %1011 = vmatprep.subr.bf16.mxu1 %v1324_v0  ;;  %s1289_s14 = scalar_lea.vmem %s924_s13, 128  ;;  %p1294_p12 = scmp.lt.s32.totalorder %s924_s13, %s924_s13 }
  0x41   :  { %p1290_p11 = scmp.ne.s32.totalorder %s924_s13, %s1289_s14  ;;  %p1295_p13 = scmp.lt.s32.totalorder %s1289_s14, %s1289_s14 }
  0x42   :  { %1006 = vmatmul.mubr.msk.bf16.vlgmr.msra.gmra.mxu0 %vm121_vm1, %v1086_v2 }
  0x43   :  { %1021 = vmatprep.mubr.msk.bf16.mxu0 %vm1325_vm0, %v1324_v0  ;;  %1018 = vmatpush3.bf16.msra.mxu0 %v1413_v3  ;;  %p1296_p0 = por %p1295_p13, %p1294_p12 }
  0x44   :  { %1019 = vmatprep.subr.bf16.mxu0 %v1324_v0  ;;  %1012 = vmatpush3.bf16.msra.mxu1 %v1090_v6 }
  0x45   :  { %1025 = vmatprep.subr.bf16.mxu1 %v1324_v0  ;;  %p1297_p1 = pnand %p1296_p0, %p1290_p11 }
  0x47   :  { %1020 = vmatpush3.bf16.msra.mxu0 %v1417_v5 }
  0x48   :  { %1033 = vmatprep.subr.bf16.mxu0 %v1324_v0 }
  0x4a   :  { %1022 = vmatmul.mubr.bf16.vlgmr.msra.gmra.mxu0 %v1326_v7 }
  0x4b   :  { %1034 = vmatpush3.bf16.msra.mxu0 %v1413_v3  ;;  %1037 = vmatprep.mubr.msk.bf16.mxu0 %vm1325_vm0, %v1324_v0 }
  0x4c   :  { %1035 = vmatprep.subr.bf16.mxu0 %v1324_v0 }
  0x4f   :  { %1036 = vmatpush3.bf16.msra.mxu0 %v1417_v5 }
  0x50   :  { %1049 = vmatprep.subr.bf16.mxu0 %v1324_v0 }
 0x102   :  { %v159_v9 = vpop.f32.mrf.mxu0 }
 0x103   :  { %v160_v11 = vadd.f32 %v937_v8, %v159_v9 }
 0x104   :  { %v1007_v10 = vpop.f32.mrf.mxu0 }
 0x105   :  { %v166_v15 = vmax.f32 %v160_v11, 0.0 }
 0x106   :  { %v162_v12 = vpop.f32.mrf.mxu0 }
 0x107   :  { %v163_v13 = vadd.f32 %v937_v8, %v162_v12 }
 0x108   :  { %v1008_v14 = vpop.f32.mrf.mxu0 }
 0x109   :  { %v167_v16 = vmax.f32 %v163_v13, 0.0 }
 0x10a   :  { %v290_v18 = vpop.f32.mrf.mxu0 }
 0x10b   :  { %v168_v17 = vpack.c.bf16 %v167_v16, %v166_v15 }
 0x10c   :  { %v1023_v19 = vpop.f32.mrf.mxu0 }
 0x10d   :  { %1014 = vmatmul.mubr.msk.bf16.vlgmr.msra.gmra.mxu1 %vm192_vm2, %v168_v17 }
 0x10e   :  { %1026 = vmatpush3.bf16.msra.mxu1 %v1413_v3  ;;  %1029 = vmatprep.mubr.msk.bf16.mxu1 %vm1325_vm0, %v1324_v0  ;;  %v293_v20 = vpop.f32.mrf.mxu0 }
 0x10f   :  { %1027 = vmatprep.subr.bf16.mxu1 %v1324_v0 }
 0x110   :  { %v1024_v21 = vpop.f32.mrf.mxu0 }
 0x112   :  { %1028 = vmatpush3.bf16.msra.mxu1 %v1417_v5 }
 0x113   :  { %1041 = vmatprep.subr.bf16.mxu1 %v1324_v0 }
 0x1cd   :  { %v230_v23 = vpop.f32.mrf.mxu1 }
 0x1ce   :  { %v1442_v24 = vadd.f32 %v941_v22, %v230_v23 }
 0x1cf   :  { %v1015_v25 = vpop.f32.mrf.mxu1 }
 0x1d0   :  { %v297_v26 = vadd.f32 %v290_v18, %v1442_v24 }
 0x1d1   :  { %v233_v27 = vpop.f32.mrf.mxu1 }
 0x1d2   :  { %v1445_v28 = vadd.f32 %v941_v22, %v233_v27  ;;  %1093 = vtanh.f32 %v297_v26  ;;  %v947_v33 = vmul.f32 -1.442695, %v297_v26 }
 0x1d3   :  { %v1016_v29 = vpop.f32.mrf.mxu1 }
 0x1d4   :  { %v298_v30 = vadd.f32 %v293_v20, %v1445_v28 }
 0x1d6   :  { %1095 = vtanh.f32 %v298_v30  ;;  %v948_v34 = vmul.f32 -1.442695, %v298_v30 }
 0x1d7   :  { %1097 = vpow2.f32 %v947_v33 }
 0x1d8   :  { %1099 = vpow2.f32 %v948_v34 }
 0x1df   :  { %v1094_v31 = vpop.eup %1093 }
 0x1e0   :  { %317 = vrot.lane.b32.xlu0 %v1094_v31, %s1319_s10 }
 0x1e3   :  { %v1096_v32 = vpop.eup %1095 }
 0x1e4   :  { %319 = vrot.lane.b32.xlu0 %v1096_v32, %s1319_s10  ;;  %v1098_v35 = vpop.eup %1097 }
 0x1e5   :  { %v305_v36 = vadd.f32 1.0, %v1098_v35  ;;  %v1100_v37 = vpop.eup %1099 }
 0x1e6   :  { %v306_v38 = vadd.f32 1.0, %v1100_v37 }
 0x1e7   :  { %1101 = vrcp.f32 %v305_v36 }
 0x1e8   :  { %1103 = vrcp.f32 %v306_v38 }
 0x1f4   :  { %v1102_v39 = vpop.eup %1101 }
 0x1f5   :  { %v1104_v42 = vpop.eup %1103  ;;  %v313_v45 = vmul.f32 0.0, %v1102_v39 }
 0x1f6   :  { %v314_v48 = vmul.f32 0.0, %v1104_v42 }
 0x252   :  { %v318_v40 = vpop.permute.xlu0 %317 }
 0x253   :  { %v323_v41 = vmul.f32 %v1102_v39, %v318_v40 }
 0x255   :  { %327 = vrot.lane.b32.xlu1 %v323_v41, %s1327_s5 }
 0x256   :  { %v320_v43 = vpop.permute.xlu0 %319 }
 0x257   :  { %v324_v44 = vmul.f32 %v1104_v42, %v320_v43 }
 0x259   :  { %329 = vrot.lane.b32.xlu1 %v324_v44, %s1327_s5 }
 0x2c7   :  { %v328_v46 = vpop.permute.xlu1 %327 }
 0x2c8   :  { %v333_v47 = vadd.f32 %v328_v46, %v313_v45 }
 0x2ca   :  { %1105 = vtanh.f32 %v333_v47 }
 0x2cb   :  { %v330_v49 = vpop.permute.xlu1 %329 }
 0x2cc   :  { %v334_v50 = vadd.f32 %v330_v49, %v314_v48 }
 0x2ce   :  { %1107 = vtanh.f32 %v334_v50 }
 0x2d7   :  { %v1106_v51 = vpop.eup %1105 }
 0x2d8   :  { %339 = vrot.lane.b32.xlu0 %v1106_v51, %s1319_s10 }
 0x2db   :  { %v1108_v52 = vpop.eup %1107 }
 0x2dc   :  { %341 = vrot.lane.b32.xlu1 %v1108_v52, %s1319_s10 }
 0x34a   :  { %v340_v53 = vpop.permute.xlu0 %339 }
 0x34b   :  { %v345_v55 = vmul.f32 %v1102_v39, %v340_v53 }
 0x34e   :  { %v342_v54 = vpop.permute.xlu1 %341 }
 0x34f   :  { %v346_v56 = vmul.f32 %v1104_v42, %v342_v54 }
 0x351   :  { %v347_v57 = vpack.c.bf16 %v346_v56, %v345_v55 }
 0x353   :  { %349 = vrot.lane.b32.xlu0 %v347_v57, %s1327_s5 }
 0x3c5   :  { %v350_v58 = vpop.permute.xlu0 %349 }
 0x3c6   :  { %1030 = vmatmul.mubr.msk.bf16.vlgmr.msra.gmra.mxu1 %vm192_vm2, %v350_v58 }
 0x3c7   :  { %1042 = vmatpush3.bf16.msra.mxu1 %v1413_v3  ;;  %1045 = vmatprep.mubr.msk.bf16.mxu1 %vm1325_vm0, %v1324_v0 }
 0x3c8   :  { %1043 = vmatprep.subr.bf16.mxu1 %v1324_v0 }
 0x3cb   :  { %1044 = vmatpush3.bf16.msra.mxu1 %v1417_v5 }
 0x3cc   :  { %1057 = vmatprep.subr.bf16.mxu1 %v1324_v0 }
 0x486   :  { %v388_v59 = vpop.f32.mrf.mxu1 }
 0x487   :  { %v395_v60 = vadd.f32 %v388_v59, %v1442_v24 }
 0x488   :  { %v1031_v61 = vpop.f32.mrf.mxu1 }
 0x489   :  { %1109 = vtanh.f32 %v395_v60  ;;  %v950_v6 = vmul.f32 -1.442695, %v395_v60 }
 0x48a   :  { %v391_v62 = vpop.f32.mrf.mxu1 }
 0x48b   :  { %v396_v63 = vadd.f32 %v391_v62, %v1445_v28 }
 0x48c   :  { %v1032_v1 = vpop.f32.mrf.mxu1 }
 0x48d   :  { %1111 = vtanh.f32 %v396_v63  ;;  %v951_v7 = vmul.f32 -1.442695, %v396_v63 }
 0x48e   :  { %1113 = vpow2.f32 %v950_v6 }
 0x48f   :  { %1115 = vpow2.f32 %v951_v7 }
 0x496   :  { %v1110_v2 = vpop.eup %1109 }
 0x497   :  { %415 = vrot.lane.b32.xlu1 %v1110_v2, %s1319_s10 }
 0x49a   :  { %v1112_v4 = vpop.eup %1111 }
 0x49b   :  { %417 = vrot.lane.b32.xlu0 %v1112_v4, %s1319_s10  ;;  %v1114_v8 = vpop.eup %1113 }
 0x49c   :  { %v403_v9 = vadd.f32 1.0, %v1114_v8  ;;  %v1116_v10 = vpop.eup %1115 }
 0x49d   :  { %v404_v11 = vadd.f32 1.0, %v1116_v10 }
 0x49e   :  { %1117 = vrcp.f32 %v403_v9 }
 0x49f   :  { %1119 = vrcp.f32 %v404_v11 }
 0x4ab   :  { %v1118_v12 = vpop.eup %1117 }
 0x4ac   :  { %v1120_v15 = vpop.eup %1119  ;;  %v411_v18 = vmul.f32 %v1118_v12, %v333_v47 }
 0x4ad   :  { %v412_v21 = vmul.f32 %v1120_v15, %v334_v50 }
 0x509   :  { %v416_v13 = vpop.permute.xlu1 %415 }
 0x50a   :  { %v421_v14 = vmul.f32 %v1118_v12, %v416_v13 }
 0x50c   :  { %425 = vrot.lane.b32.xlu1 %v421_v14, %s1327_s5 }
 0x50d   :  { %v418_v16 = vpop.permute.xlu0 %417 }
 0x50e   :  { %v422_v17 = vmul.f32 %v1120_v15, %v418_v16 }
 0x510   :  { %427 = vrot.lane.b32.xlu0 %v422_v17, %s1327_s5 }
 0x57e   :  { %v426_v19 = vpop.permute.xlu1 %425 }
 0x57f   :  { %v431_v20 = vadd.f32 %v426_v19, %v411_v18 }
 0x581   :  { %1121 = vtanh.f32 %v431_v20 }
 0x582   :  { %v428_v22 = vpop.permute.xlu0 %427 }
 0x583   :  { %v432_v23 = vadd.f32 %v428_v22, %v412_v21 }
 0x585   :  { %1123 = vtanh.f32 %v432_v23 }
 0x58e   :  { %v1122_v25 = vpop.eup %1121 }
 0x58f   :  { %437 = vrot.lane.b32.xlu1 %v1122_v25, %s1319_s10 }
 0x592   :  { %v1124_v26 = vpop.eup %1123 }
 0x593   :  { %439 = vrot.lane.b32.xlu0 %v1124_v26, %s1319_s10 }
 0x601   :  { %v438_v27 = vpop.permute.xlu1 %437 }
 0x602   :  { %v443_v30 = vmul.f32 %v1118_v12, %v438_v27 }
 0x605   :  { %v440_v29 = vpop.permute.xlu0 %439 }
 0x606   :  { %v444_v31 = vmul.f32 %v1120_v15, %v440_v29 }
 0x608   :  { %v445_v32 = vpack.c.bf16 %v444_v31, %v443_v30 }
 0x60a   :  { %447 = vrot.lane.b32.xlu1 %v445_v32, %s1327_s5 }
 0x67c   :  { %v448_v33 = vpop.permute.xlu1 %447 }
 0x67d   :  { %1038 = vmatmul.mubr.msk.bf16.vlgmr.msra.gmra.mxu0 %vm192_vm2, %v448_v33 }
 0x67e   :  { %1050 = vmatpush3.bf16.msra.mxu0 %v1413_v3  ;;  %1053 = vmatprep.mubr.msk.bf16.mxu0 %vm1325_vm0, %v1324_v0 }
 0x67f   :  { %1051 = vmatprep.subr.bf16.mxu0 %v1324_v0 }
 0x682   :  { %1052 = vmatpush3.bf16.msra.mxu0 %v1417_v5 }
 0x683   :  { %1065 = vmatprep.subr.bf16.mxu0 %v1324_v0 }
 0x73d   :  { %v486_v34 = vpop.f32.mrf.mxu0 }
 0x73e   :  { %v493_v35 = vadd.f32 %v486_v34, %v1442_v24 }
 0x73f   :  { %v1039_v36 = vpop.f32.mrf.mxu0 }
 0x740   :  { %1125 = vtanh.f32 %v493_v35  ;;  %v953_v42 = vmul.f32 -1.442695, %v493_v35 }
 0x741   :  { %v489_v37 = vpop.f32.mrf.mxu0 }
 0x742   :  { %v494_v38 = vadd.f32 %v489_v37, %v1445_v28 }
 0x743   :  { %v1040_v39 = vpop.f32.mrf.mxu0 }
 0x744   :  { %1127 = vtanh.f32 %v494_v38  ;;  %v954_v43 = vmul.f32 -1.442695, %v494_v38 }
 0x745   :  { %1129 = vpow2.f32 %v953_v42 }
 0x746   :  { %1131 = vpow2.f32 %v954_v43 }
 0x74d   :  { %v1126_v40 = vpop.eup %1125 }
 0x74e   :  { %513 = vrot.lane.b32.xlu0 %v1126_v40, %s1319_s10 }
 0x751   :  { %v1128_v41 = vpop.eup %1127 }
 0x752   :  { %515 = vrot.lane.b32.xlu1 %v1128_v41, %s1319_s10  ;;  %v1130_v44 = vpop.eup %1129 }
 0x753   :  { %v501_v45 = vadd.f32 1.0, %v1130_v44  ;;  %v1132_v46 = vpop.eup %1131 }
 0x754   :  { %v502_v47 = vadd.f32 1.0, %v1132_v46 }
 0x755   :  { %1133 = vrcp.f32 %v501_v45 }
 0x756   :  { %1135 = vrcp.f32 %v502_v47 }
 0x762   :  { %v1134_v48 = vpop.eup %1133 }
 0x763   :  { %v1136_v51 = vpop.eup %1135  ;;  %v509_v54 = vmul.f32 %v1134_v48, %v431_v20 }
 0x764   :  { %v510_v57 = vmul.f32 %v1136_v51, %v432_v23 }
 0x7c0   :  { %v514_v49 = vpop.permute.xlu0 %513 }
 0x7c1   :  { %v519_v50 = vmul.f32 %v1134_v48, %v514_v49 }
 0x7c3   :  { %523 = vrot.lane.b32.xlu0 %v519_v50, %s1327_s5 }
 0x7c4   :  { %v516_v52 = vpop.permute.xlu1 %515 }
 0x7c5   :  { %v520_v53 = vmul.f32 %v1136_v51, %v516_v52 }
 0x7c7   :  { %525 = vrot.lane.b32.xlu1 %v520_v53, %s1327_s5 }
 0x835   :  { %v524_v55 = vpop.permute.xlu0 %523 }
 0x836   :  { %v529_v56 = vadd.f32 %v524_v55, %v509_v54 }
 0x838   :  { %1137 = vtanh.f32 %v529_v56 }
 0x839   :  { %v526_v58 = vpop.permute.xlu1 %525 }
 0x83a   :  { %v530_v59 = vadd.f32 %v526_v58, %v510_v57 }
 0x83c   :  { %1139 = vtanh.f32 %v530_v59 }
 0x845   :  { %v1138_v60 = vpop.eup %1137 }
 0x846   :  { %535 = vrot.lane.b32.xlu0 %v1138_v60, %s1319_s10 }
 0x849   :  { %v1140_v61 = vpop.eup %1139 }
 0x84a   :  { %537 = vrot.lane.b32.xlu1 %v1140_v61, %s1319_s10 }
 0x8b8   :  { %v536_v62 = vpop.permute.xlu0 %535 }
 0x8b9   :  { %v541_v1 = vmul.f32 %v1134_v48, %v536_v62 }
 0x8bc   :  { %v538_v63 = vpop.permute.xlu1 %537 }
 0x8bd   :  { %v542_v2 = vmul.f32 %v1136_v51, %v538_v63 }
 0x8bf   :  { %v543_v4 = vpack.c.bf16 %v542_v2, %v541_v1 }
 0x8c1   :  { %545 = vrot.lane.b32.xlu0 %v543_v4, %s1327_s5 }
 0x933   :  { %v546_v6 = vpop.permute.xlu0 %545 }
 0x934   :  { %1046 = vmatmul.mubr.msk.bf16.vlgmr.msra.gmra.mxu1 %vm192_vm2, %v546_v6 }
 0x935   :  { %1058 = vmatpush3.bf16.msra.mxu1 %v1413_v3  ;;  %1061 = vmatprep.mubr.msk.bf16.mxu1 %vm1325_vm0, %v1324_v0 }
 0x936   :  { %1059 = vmatprep.subr.bf16.mxu1 %v1324_v0 }
 0x939   :  { %1060 = vmatpush3.bf16.msra.mxu1 %v1417_v5 }
 0x9f4   :  { %v584_v7 = vpop.f32.mrf.mxu1 }
 0x9f5   :  { %v591_v8 = vadd.f32 %v584_v7, %v1442_v24 }
 0x9f6   :  { %v1047_v9 = vpop.f32.mrf.mxu1 }
 0x9f7   :  { %1141 = vtanh.f32 %v591_v8  ;;  %v956_v14 = vmul.f32 -1.442695, %v591_v8 }
 0x9f8   :  { %v587_v10 = vpop.f32.mrf.mxu1 }
 0x9f9   :  { %v592_v11 = vadd.f32 %v587_v10, %v1445_v28 }
 0x9fa   :  { %v1048_v12 = vpop.f32.mrf.mxu1 }
 0x9fb   :  { %1143 = vtanh.f32 %v592_v11  ;;  %v957_v15 = vmul.f32 -1.442695, %v592_v11 }
 0x9fc   :  { %1145 = vpow2.f32 %v956_v14 }
 0x9fd   :  { %1147 = vpow2.f32 %v957_v15 }
 0xa04   :  { %v1142_v13 = vpop.eup %1141 }
 0xa05   :  { %611 = vrot.lane.b32.xlu1 %v1142_v13, %s1319_s10 }
 0xa08   :  { %v1144_v3 = vpop.eup %1143 }
 0xa09   :  { %613 = vrot.lane.b32.xlu0 %v1144_v3, %s1319_s10  ;;  %v1146_v5 = vpop.eup %1145 }
 0xa0a   :  { %v599_v16 = vadd.f32 1.0, %v1146_v5  ;;  %v1148_v17 = vpop.eup %1147 }
 0xa0b   :  { %v600_v18 = vadd.f32 1.0, %v1148_v17 }
 0xa0c   :  { %1149 = vrcp.f32 %v599_v16 }
 0xa0d   :  { %1151 = vrcp.f32 %v600_v18 }
 0xa19   :  { %v1150_v19 = vpop.eup %1149 }
 0xa1a   :  { %v1152_v22 = vpop.eup %1151  ;;  %v607_v26 = vmul.f32 %v1150_v19, %v529_v56 }
 0xa1b   :  { %v608_v30 = vmul.f32 %v1152_v22, %v530_v59 }
 0xa77   :  { %v612_v20 = vpop.permute.xlu1 %611 }
 0xa78   :  { %v617_v21 = vmul.f32 %v1150_v19, %v612_v20 }
 0xa7a   :  { %621 = vrot.lane.b32.xlu1 %v617_v21, %s1327_s5 }
 0xa7b   :  { %v614_v23 = vpop.permute.xlu0 %613 }
 0xa7c   :  { %v618_v25 = vmul.f32 %v1152_v22, %v614_v23 }
 0xa7e   :  { %623 = vrot.lane.b32.xlu0 %v618_v25, %s1327_s5 }
 0xaec   :  { %v622_v27 = vpop.permute.xlu1 %621 }
 0xaed   :  { %v627_v29 = vadd.f32 %v622_v27, %v607_v26 }
 0xaef   :  { %1153 = vtanh.f32 %v627_v29 }
 0xaf0   :  { %v624_v31 = vpop.permute.xlu0 %623 }
 0xaf1   :  { %v628_v32 = vadd.f32 %v624_v31, %v608_v30 }
 0xaf3   :  { %1155 = vtanh.f32 %v628_v32 }
 0xafc   :  { %v1154_v33 = vpop.eup %1153 }
 0xafd   :  { %633 = vrot.lane.b32.xlu1 %v1154_v33, %s1319_s10 }
 0xb00   :  { %v1156_v34 = vpop.eup %1155 }
 0xb01   :  { %635 = vrot.lane.b32.xlu0 %v1156_v34, %s1319_s10 }
 0xb6f   :  { %v634_v35 = vpop.permute.xlu1 %633 }
 0xb70   :  { %v639_v37 = vmul.f32 %v1150_v19, %v634_v35 }
 0xb73   :  { %v636_v36 = vpop.permute.xlu0 %635 }
 0xb74   :  { %v640_v38 = vmul.f32 %v1152_v22, %v636_v36 }
 0xb76   :  { %v641_v39 = vpack.c.bf16 %v640_v38, %v639_v37  ;;  %v1091_v38 = vld [vmem:[#allocation10 + $0x8] sm:$0xff]  }
 0xb78   :  { %643 = vrot.lane.b32.xlu1 %v641_v39, %s1327_s5  ;;  %v1092_v39 = vld [vmem:[#allocation10] sm:$0xff]  }
 0xbea   :  { %v644_v40 = vpop.permute.xlu1 %643 }
 0xbeb   :  { %1054 = vmatmul.mubr.msk.bf16.vlgmr.msra.gmra.mxu0 %vm192_vm2, %v644_v40 }
 0xbec   :  { %1069 = vmatprep.mubr.msk.bf16.mxu0 %vm1325_vm0, %v1324_v0  ;;  %1066 = vmatpush3.bf16.msra.mxu0 %v1091_v38 }
 0xbed   :  { %1067 = vmatprep.subr.bf16.mxu0 %v1324_v0  ;;  %v964_v0 = vld [vmem:[%s1542_s7] ss:$0 sm:$0xff] }
 0xbf0   :  { %1068 = vmatpush3.bf16.msra.mxu0 %v1092_v39 }
 0xcab   :  { %v682_v41 = vpop.f32.mrf.mxu0 }
 0xcac   :  { %v689_v42 = vadd.f32 %v682_v41, %v1442_v24 }
 0xcad   :  { %v1055_v43 = vpop.f32.mrf.mxu0 }
 0xcae   :  { %1157 = vtanh.f32 %v689_v42  ;;  %v959_v49 = vmul.f32 -1.442695, %v689_v42 }
 0xcaf   :  { %v685_v44 = vpop.f32.mrf.mxu0 }
 0xcb0   :  { %v690_v45 = vadd.f32 %v685_v44, %v1445_v28 }
 0xcb1   :  { %v1056_v46 = vpop.f32.mrf.mxu0 }
 0xcb2   :  { %1159 = vtanh.f32 %v690_v45  ;;  %v960_v50 = vmul.f32 -1.442695, %v690_v45 }
 0xcb3   :  { %1161 = vpow2.f32 %v959_v49 }
 0xcb4   :  { %1163 = vpow2.f32 %v960_v50 }
 0xcbb   :  { %v1158_v47 = vpop.eup %1157 }
 0xcbc   :  { %709 = vrot.lane.b32.xlu0 %v1158_v47, %s1319_s10 }
 0xcbf   :  { %v1160_v48 = vpop.eup %1159 }
 0xcc0   :  { %711 = vrot.lane.b32.xlu1 %v1160_v48, %s1319_s10  ;;  %v1162_v51 = vpop.eup %1161 }
 0xcc1   :  { %v697_v52 = vadd.f32 1.0, %v1162_v51  ;;  %v1164_v53 = vpop.eup %1163 }
 0xcc2   :  { %v698_v54 = vadd.f32 1.0, %v1164_v53 }
 0xcc3   :  { %1165 = vrcp.f32 %v697_v52 }
 0xcc4   :  { %1167 = vrcp.f32 %v698_v54 }
 0xcd0   :  { %v1166_v55 = vpop.eup %1165 }
 0xcd1   :  { %v1168_v58 = vpop.eup %1167  ;;  %v705_v61 = vmul.f32 %v1166_v55, %v627_v29 }
 0xcd2   :  { %v706_v1 = vmul.f32 %v1168_v58, %v628_v32 }
 0xd2e   :  { %v710_v56 = vpop.permute.xlu0 %709 }
 0xd2f   :  { %v715_v57 = vmul.f32 %v1166_v55, %v710_v56 }
 0xd31   :  { %719 = vrot.lane.b32.xlu0 %v715_v57, %s1327_s5 }
 0xd32   :  { %v712_v59 = vpop.permute.xlu1 %711 }
 0xd33   :  { %v716_v60 = vmul.f32 %v1168_v58, %v712_v59 }
 0xd35   :  { %721 = vrot.lane.b32.xlu1 %v716_v60, %s1327_s5 }
 0xda3   :  { %v720_v62 = vpop.permute.xlu0 %719 }
 0xda4   :  { %v725_v63 = vadd.f32 %v720_v62, %v705_v61 }
 0xda6   :  { %1169 = vtanh.f32 %v725_v63 }
 0xda7   :  { %v722_v2 = vpop.permute.xlu1 %721 }
 0xda8   :  { %v726_v4 = vadd.f32 %v722_v2, %v706_v1 }
 0xdaa   :  { %1171 = vtanh.f32 %v726_v4 }
 0xdb3   :  { %v1170_v6 = vpop.eup %1169 }
 0xdb4   :  { %731 = vrot.lane.b32.xlu0 %v1170_v6, %s1319_s10 }
 0xdb7   :  { %v1172_v7 = vpop.eup %1171 }
 0xdb8   :  { %733 = vrot.lane.b32.xlu1 %v1172_v7, %s1319_s10 }
 0xe26   :  { %v732_v8 = vpop.permute.xlu0 %731 }
 0xe27   :  { %v737_v10 = vmul.f32 %v1166_v55, %v732_v8 }
 0xe2a   :  { %v734_v9 = vpop.permute.xlu1 %733 }
 0xe2b   :  { %v738_v11 = vmul.f32 %v1168_v58, %v734_v9 }
 0xe2d   :  { %v739_v12 = vpack.c.bf16 %v738_v11, %v737_v10 }
 0xe2f   :  { %741 = vrot.lane.b32.xlu0 %v739_v12, %s1327_s5 }
 0xea1   :  { %v742_v13 = vpop.permute.xlu0 %741 }
 0xea2   :  { %1062 = vmatmul.mubr.msk.bf16.vlgmr.msra.gmra.mxu1 %vm192_vm2, %v742_v13 }
 0xf62   :  { %v780_v3 = vpop.f32.mrf.mxu1 }
 0xf63   :  { %v787_v14 = vadd.f32 %v780_v3, %v1442_v24 }
 0xf64   :  { %v1063_v15 = vpop.f32.mrf.mxu1 }
 0xf65   :  { %1173 = vtanh.f32 %v787_v14  ;;  %v962_v20 = vmul.f32 -1.442695, %v787_v14 }
 0xf66   :  { %v783_v5 = vpop.f32.mrf.mxu1 }
 0xf67   :  { %v788_v16 = vadd.f32 %v783_v5, %v1445_v28 }
 0xf68   :  { %v1064_v17 = vpop.f32.mrf.mxu1 }
 0xf69   :  { %1175 = vtanh.f32 %v788_v16  ;;  %v963_v21 = vmul.f32 -1.442695, %v788_v16 }
 0xf6a   :  { %1177 = vpow2.f32 %v962_v20 }
 0xf6b   :  { %1179 = vpow2.f32 %v963_v21 }
 0xf72   :  { %v1174_v18 = vpop.eup %1173 }
 0xf73   :  { %807 = vrot.lane.b32.xlu1 %v1174_v18, %s1319_s10 }
 0xf76   :  { %v1176_v19 = vpop.eup %1175 }
 0xf77   :  { %809 = vrot.lane.b32.xlu0 %v1176_v19, %s1319_s10  ;;  %v1178_v22 = vpop.eup %1177 }
 0xf78   :  { %v795_v23 = vadd.f32 1.0, %v1178_v22  ;;  %v1180_v24 = vpop.eup %1179 }
 0xf79   :  { %v796_v25 = vadd.f32 1.0, %v1180_v24 }
 0xf7a   :  { %1181 = vrcp.f32 %v795_v23 }
 0xf7b   :  { %1183 = vrcp.f32 %v796_v25 }
 0xf87   :  { %v1182_v26 = vpop.eup %1181 }
 0xf88   :  { %v1184_v29 = vpop.eup %1183  ;;  %v803_v32 = vmul.f32 %v1182_v26, %v725_v63 }
 0xf89   :  { %v804_v35 = vmul.f32 %v1184_v29, %v726_v4 }
 0xfe5   :  { %v808_v28 = vpop.permute.xlu1 %807 }
 0xfe6   :  { %v813_v27 = vmul.f32 %v1182_v26, %v808_v28 }
 0xfe8   :  { %817 = vrot.lane.b32.xlu1 %v813_v27, %s1327_s5 }
 0xfe9   :  { %v810_v30 = vpop.permute.xlu0 %809 }
 0xfea   :  { %v814_v31 = vmul.f32 %v1184_v29, %v810_v30 }
 0xfec   :  { %819 = vrot.lane.b32.xlu0 %v814_v31, %s1327_s5 }
0x105a   :  { %v818_v33 = vpop.permute.xlu1 %817 }
0x105b   :  { %v823_v34 = vadd.f32 %v818_v33, %v803_v32 }
0x105d   :  { %1185 = vtanh.f32 %v823_v34 }
0x105e   :  { %v820_v36 = vpop.permute.xlu0 %819 }
0x105f   :  { %v824_v37 = vadd.f32 %v820_v36, %v804_v35 }
0x1061   :  { %1187 = vtanh.f32 %v824_v37 }
0x106a   :  { %v1186_v40 = vpop.eup %1185 }
0x106b   :  { %829 = vrot.lane.b32.xlu1 %v1186_v40, %s1319_s10 }
0x106e   :  { %v1188_v41 = vpop.eup %1187 }
0x106f   :  { %831 = vrot.lane.b32.xlu0 %v1188_v41, %s1319_s10 }
0x10dd   :  { %v830_v42 = vpop.permute.xlu1 %829 }
0x10de   :  { %v835_v44 = vmul.f32 %v1182_v26, %v830_v42 }
0x10e1   :  { %v832_v43 = vpop.permute.xlu0 %831 }
0x10e2   :  { %v836_v45 = vmul.f32 %v1184_v29, %v832_v43 }
0x10e4   :  { %v837_v46 = vpack.c.bf16 %v836_v45, %v835_v44 }
0x10e6   :  { %850 = vrot.lane.b32.xlu1 %v837_v46, %s1327_s5 }
0x1158   :  { %v851_v47 = vpop.permute.xlu1 %850 }
0x1159   :  { %1070 = vmatmul.mubr.msk.bf16.vlgmr.msra.gmra.mxu0 %vm192_vm2, %v851_v47 }
0x1219   :  { %v901_v48 = vpop.f32.mrf.mxu0 }
0x121a   :  { %v902_v51 = vadd.f32 %v964_v0, %v901_v48 }
0x121b   :  { %v1071_v49 = vpop.f32.mrf.mxu0 }
0x121d   :  { %v904_v50 = vpop.f32.mrf.mxu0 }
0x121e   :  { %v905_v52 = vadd.f32 %v964_v0, %v904_v50 }
0x121f   :  { %v1072_v53 = vpop.f32.mrf.mxu0 }
0x1220   :  { %v975_v54 = vpack.c.bf16 %v905_v52, %v902_v51 }
0x1222   :  { %976 = vst [vmem:[#allocation11] sm:$0xff] %v975_v54  }
0x1223   :  { %1300 = shalt.err (!%p1297_p1)
}
0x1224   :  { %929 = dma.vmem_to_hbm [thread:$0]  %s924_s13, 128, %s1543_s8, [#allocation4], %s1319_s10, %s1319_s10, %s1320_s11  }
0x1225   :  { %1315 = dma.done.wait [#allocation4], 128  }
0x1226   :  { %1316 = vsyncadd [#allocation4], 4294967168 }
0x1227   :  { %933 = vsyncpa [#allocation3], 1 }
0x1228   :  { %934 = vsyncpa [#allocation6], 1 }
0x1229   :  { %935 = vsyncpa [#allocation9], 1 }
0x122a   :  { %936 = vsyncpa [#allocation4], 1 }

</bundles_post_ra>
